<compile_context>
chip_gen: v7x
topology: tpu7x:2x2x1
jax: 0.10.0
libtpu: 0.0.40
codegen_flags: <defaults>
</compile_context>

<pallas_src>
import math

import jax
import jax.numpy as jnp
from jax.experimental import pallas as pl
from jax.experimental.pallas import tpu as pltpu


def _round_up(x, m):
    return ((x + m - 1) // m) * m


def _pad_last(x, target):
    pad = target - x.shape[-1]
    if pad == 0:
        return x
    cfg = [(0, 0)] * (x.ndim - 1) + [(0, pad)]
    return jnp.pad(x, cfg)


def _pad_rows(x, target):
    pad = target - x.shape[0]
    if pad == 0:
        return x
    cfg = [(0, pad)] + [(0, 0)] * (x.ndim - 1)
    return jnp.pad(x, cfg)


def _pick_block_b(b_pad):
    """Block size along batch (multiple of 8).

    Small problems run as ONE grid step (per-step overhead >> compute).
    Large batches get 256-512-row blocks so the MXU M dimension is fed;
    prefer an exact divisor of the padded batch, else fall back to 256 and
    let the wrapper pad the batch up to a block multiple.
    """
    if b_pad <= 512:
        return b_pad
    for cand in range(512, 255, -8):
        if b_pad % cand == 0:
            return cand
    for cand in range(256, 127, -8):
        if b_pad % cand == 0:
            return cand
    return 256


def plrnn_clipping_step_kernel(z_ref, s_ref, Wt_ref, Ct_ref, params_ref,
                               alphas_ref, out_ref):
    # params_ref: row 0 = A, rows 1..db = thetas.T (each row lane-dense over dz)
    # alphas_ref: SMEM, entries 0..db-1 = alphas, entry db = -sum(alphas)
    z = z_ref[...]                                   # (bm, dz_pad)
    relu_z = jnp.maximum(z, 0.0)

    db = params_ref.shape[0] - 1                     # static -> fully unrolled
    # be_clip = sum_j alphas[j]*relu(z + theta_j) - relu(z)*sum(alphas)
    acc = alphas_ref[db] * relu_z                    # scalar (sreg) * vector
    for j in range(db):
        theta_j = params_ref[j + 1:j + 2, :]         # (1, dz_pad) lane-dense row
        acc = acc + alphas_ref[j] * jnp.maximum(z + theta_j, 0.0)

    # Plain MXU matmuls (transposes hoisted to the wrapper).
    wz = jnp.dot(acc, Wt_ref[...], preferred_element_type=jnp.float32)
    # Ct_ref carries an extra h row matched by the ones column of s -> cs
    # already contains the +h bias.
    cs = jnp.dot(s_ref[...], Ct_ref[...], preferred_element_type=jnp.float32)

    out = params_ref[0:1, :] * z + wz + cs
    out_ref[...] = out.astype(out_ref.dtype)


def plrnn_clipping_step(z, s, A, W, h, C, alphas, thetas, *, block_b=None):
    """Single latent step of PLRNN_Clipping_Step (shared-W branch)."""
    B, dz = z.shape
    ds = s.shape[1]
    db = alphas.shape[0]
    cdtype = z.dtype

    dz_pad = _round_up(dz, 128)
    ds_aug = ds + 1                     # +1 ones column carries the h bias

    B_pad = _round_up(B, 8)
    if block_b is None:
        block_b = _pick_block_b(B_pad)
    assert block_b % 8 == 0, "block_b must be a multiple of 8 sublanes"
    B_final = _round_up(B_pad, block_b)
    num_blocks = B_final // block_b

    # --- loop-invariant parameter prep (done once, outside the kernel) ---
    z_p = _pad_rows(_pad_last(z, dz_pad), B_final)                    # (Bf, dz_pad)
    ones_col = jnp.ones((B, 1), dtype=cdtype)
    s_aug = _pad_rows(jnp.concatenate([s.astype(cdtype), ones_col], axis=1),
                      B_final)                                        # (Bf, ds+1)
    Wt = jnp.pad(W.T.astype(cdtype),
                 ((0, dz_pad - dz), (0, dz_pad - dz)))                # (dz_pad, dz_pad)
    Ct = _pad_last(
        jnp.concatenate([C.T.astype(cdtype),
                         h.reshape(1, dz).astype(cdtype)], axis=0),
        dz_pad)                                                       # (ds+1, dz_pad)
    params = _pad_last(
        jnp.concatenate([A.reshape(1, dz).astype(cdtype),
                         thetas.T.astype(cdtype)], axis=0),
        dz_pad)                                                       # (db+1, dz_pad)
    alphas_ext = jnp.concatenate(
        [alphas.astype(jnp.float32),
         (-jnp.sum(alphas)).astype(jnp.float32).reshape(1)])          # (db+1,)

    # "parallel" (megacore sharding) only pays when each core gets real work.
    sem = ("parallel",) if (num_blocks > 1 and block_b >= 128) else ("arbitrary",)

    # Rough double-buffered VMEM need; only raise the scoped limit if needed
    # (keeps headroom on v7x's 64 MiB physical / 32 MiB scoped default).
    itemsize = 4
    per_step = (2 * block_b * dz_pad + block_b * ds_aug + dz_pad * dz_pad
                + ds_aug * dz_pad + (db + 1) * dz_pad) * itemsize
    cp_kwargs = dict(dimension_semantics=sem)
    vmem_need = 2 * per_step
    if vmem_need > (30 << 20):
        cp_kwargs["vmem_limit_bytes"] = int(min(vmem_need + (8 << 20), 128 << 20))

    grid = (num_blocks,)
    out_p = pl.pallas_call(
        plrnn_clipping_step_kernel,
        out_shape=jax.ShapeDtypeStruct((B_final, dz_pad), z.dtype),
        grid_spec=pltpu.PrefetchScalarGridSpec(
            num_scalar_prefetch=0,
            grid=grid,
            in_specs=[
                pl.BlockSpec((block_b, dz_pad), lambda i: (i, 0)),   # z
                pl.BlockSpec((block_b, ds_aug), lambda i: (i, 0)),   # [s, 1]
                pl.BlockSpec((dz_pad, dz_pad),  lambda i: (0, 0)),   # W.T
                pl.BlockSpec((ds_aug, dz_pad),  lambda i: (0, 0)),   # [C.T; h]
                pl.BlockSpec((db + 1, dz_pad),  lambda i: (0, 0)),   # [A; thetas.T]
                pl.BlockSpec(memory_space=pltpu.MemorySpace.SMEM),   # alphas (+ -sum)
            ],
            out_specs=pl.BlockSpec((block_b, dz_pad), lambda i: (i, 0)),
        ),
        compiler_params=pltpu.CompilerParams(**cp_kwargs),
    )(z_p, s_aug, Wt, Ct, params, alphas_ext)

    return out_p[:B, :dz]


def plrnn_clipping_step_ref(z, s, A, W, h, C, alphas, thetas):
    """Pure-JAX reference mirroring the PyTorch forward exactly."""
    z_norm = z[:, :, None]                                             # (B, dz, 1)
    be_clip = jnp.sum(
        alphas * (jax.nn.relu(z_norm + thetas) - jax.nn.relu(z_norm)), axis=-1)
    return A * z + be_clip @ W.T + h + s @ C.T


if __name__ == "__main__":
    # Small shapes consistent with the module: latent dz, input ds, bases db.
    B, dz, ds, db = 16, 32, 16, 8

    key = jax.random.PRNGKey(0)
    keys = jax.random.split(key, 8)

    def init_uniform(k, shape):
        # matches Latent_Step.init_uniform: U(-r, r), r = 1/sqrt(shape[-1])
        r = 1.0 / math.sqrt(shape[-1])
        return jax.random.uniform(k, shape, jnp.float32, minval=-r, maxval=r)

    A = init_uniform(keys[0], (dz,))
    W = init_uniform(keys[1], (dz, dz))
    h = init_uniform(keys[2], (dz,))
    C = init_uniform(keys[3], (dz, ds))
    thetas = init_uniform(keys[4], (dz, db))
    alphas = init_uniform(keys[5], (db,))

    z = jax.random.normal(keys[6], (B, dz), jnp.float32)
    s = jax.random.normal(keys[7], (B, ds), jnp.float32)

    out = plrnn_clipping_step(z, s, A, W, h, C, alphas, thetas)
    out = jax.block_until_ready(out)

    ref = plrnn_clipping_step_ref(z, s, A, W, h, C, alphas, thetas)
    assert out.shape == (B, dz) and out.dtype == jnp.float32
    assert jnp.allclose(out, ref, atol=1e-5, rtol=1e-5), "mismatch vs reference"

    print("KERNEL_OK")
</pallas_src>

<mosaic_0001>
module attributes {stable_mosaic.version = 11 : i64} {
  func.func @plrnn_clipping_step_kernel(%arg0: i32, %arg1: memref<16x128xf32, #tpu.memory_space<vmem>>, %arg2: memref<16x17xf32, #tpu.memory_space<vmem>>, %arg3: memref<128x128xf32, #tpu.memory_space<vmem>>, %arg4: memref<17x128xf32, #tpu.memory_space<vmem>>, %arg5: memref<9x128xf32, #tpu.memory_space<vmem>>, %arg6: memref<9xf32, #tpu.memory_space<smem>>, %arg7: memref<16x128xf32, #tpu.memory_space<vmem>>) attributes {dimension_semantics = [#tpu.dimension_semantics<arbitrary>], iteration_bounds = array<i64: 1>, scalar_prefetch = 0 : i64, scratch_operands = 0 : i64, tpu.core_type = #tpu.core_type<tc>, window_params = [{transform_indices = @transform_0, window_bounds = array<i64: 16, 128>}, {transform_indices = @transform_1, window_bounds = array<i64: 16, 17>}, {pipeline_mode = #tpu.pipeline_mode<synchronous>, transform_indices = @transform_2, window_bounds = array<i64: 128, 128>}, {pipeline_mode = #tpu.pipeline_mode<synchronous>, transform_indices = @transform_3, window_bounds = array<i64: 17, 128>}, {pipeline_mode = #tpu.pipeline_mode<synchronous>, transform_indices = @transform_4, window_bounds = array<i64: 9, 128>}, {transform_indices = @transform_5, window_bounds = array<i64: 9>}, {transform_indices = @transform_6, window_bounds = array<i64: 16, 128>}]} {
    %c0 = arith.constant 0 : index
    %c0_0 = arith.constant 0 : index
    %0 = vector.load %arg1[%c0, %c0_0] : memref<16x128xf32, #tpu.memory_space<vmem>>, vector<16x128xf32>
    %cst = arith.constant 0.000000e+00 : f32
    %1 = vector.broadcast %cst : f32 to vector<16x128xf32>
    %2 = arith.maximumf %0, %1 : vector<16x128xf32>
    %c8 = arith.constant 8 : index
    %3 = memref.load %arg6[%c8] : memref<9xf32, #tpu.memory_space<smem>>
    %4 = vector.broadcast %3 : f32 to vector<16x128xf32>
    %5 = arith.mulf %4, %2 : vector<16x128xf32>
    %c1 = arith.constant 1 : index
    %c0_1 = arith.constant 0 : index
    %6 = vector.load %arg5[%c1, %c0_1] : memref<9x128xf32, #tpu.memory_space<vmem>>, vector<1x128xf32>
    %c0_2 = arith.constant 0 : index
    %7 = memref.load %arg6[%c0_2] : memref<9xf32, #tpu.memory_space<smem>>
    %8 = vector.broadcast %6 : vector<1x128xf32> to vector<16x128xf32>
    %9 = arith.addf %0, %8 : vector<16x128xf32>
    %cst_3 = arith.constant 0.000000e+00 : f32
    %10 = vector.broadcast %cst_3 : f32 to vector<16x128xf32>
    %11 = arith.maximumf %9, %10 : vector<16x128xf32>
    %12 = vector.broadcast %7 : f32 to vector<16x128xf32>
    %13 = arith.mulf %12, %11 : vector<16x128xf32>
    %14 = arith.addf %5, %13 : vector<16x128xf32>
    %c2 = arith.constant 2 : index
    %c0_4 = arith.constant 0 : index
    %15 = vector.load %arg5[%c2, %c0_4] : memref<9x128xf32, #tpu.memory_space<vmem>>, vector<1x128xf32>
    %c1_5 = arith.constant 1 : index
    %16 = memref.load %arg6[%c1_5] : memref<9xf32, #tpu.memory_space<smem>>
    %17 = vector.broadcast %15 : vector<1x128xf32> to vector<16x128xf32>
    %18 = arith.addf %0, %17 : vector<16x128xf32>
    %cst_6 = arith.constant 0.000000e+00 : f32
    %19 = vector.broadcast %cst_6 : f32 to vector<16x128xf32>
    %20 = arith.maximumf %18, %19 : vector<16x128xf32>
    %21 = vector.broadcast %16 : f32 to vector<16x128xf32>
    %22 = arith.mulf %21, %20 : vector<16x128xf32>
    %23 = arith.addf %14, %22 : vector<16x128xf32>
    %c3 = arith.constant 3 : index
    %c0_7 = arith.constant 0 : index
    %24 = vector.load %arg5[%c3, %c0_7] : memref<9x128xf32, #tpu.memory_space<vmem>>, vector<1x128xf32>
    %c2_8 = arith.constant 2 : index
    %25 = memref.load %arg6[%c2_8] : memref<9xf32, #tpu.memory_space<smem>>
    %26 = vector.broadcast %24 : vector<1x128xf32> to vector<16x128xf32>
    %27 = arith.addf %0, %26 : vector<16x128xf32>
    %cst_9 = arith.constant 0.000000e+00 : f32
    %28 = vector.broadcast %cst_9 : f32 to vector<16x128xf32>
    %29 = arith.maximumf %27, %28 : vector<16x128xf32>
    %30 = vector.broadcast %25 : f32 to vector<16x128xf32>
    %31 = arith.mulf %30, %29 : vector<16x128xf32>
    %32 = arith.addf %23, %31 : vector<16x128xf32>
    %c4 = arith.constant 4 : index
    %c0_10 = arith.constant 0 : index
    %33 = vector.load %arg5[%c4, %c0_10] : memref<9x128xf32, #tpu.memory_space<vmem>>, vector<1x128xf32>
    %c3_11 = arith.constant 3 : index
    %34 = memref.load %arg6[%c3_11] : memref<9xf32, #tpu.memory_space<smem>>
    %35 = vector.broadcast %33 : vector<1x128xf32> to vector<16x128xf32>
    %36 = arith.addf %0, %35 : vector<16x128xf32>
    %cst_12 = arith.constant 0.000000e+00 : f32
    %37 = vector.broadcast %cst_12 : f32 to vector<16x128xf32>
    %38 = arith.maximumf %36, %37 : vector<16x128xf32>
    %39 = vector.broadcast %34 : f32 to vector<16x128xf32>
    %40 = arith.mulf %39, %38 : vector<16x128xf32>
    %41 = arith.addf %32, %40 : vector<16x128xf32>
    %c5 = arith.constant 5 : index
    %c0_13 = arith.constant 0 : index
    %42 = vector.load %arg5[%c5, %c0_13] : memref<9x128xf32, #tpu.memory_space<vmem>>, vector<1x128xf32>
    %c4_14 = arith.constant 4 : index
    %43 = memref.load %arg6[%c4_14] : memref<9xf32, #tpu.memory_space<smem>>
    %44 = vector.broadcast %42 : vector<1x128xf32> to vector<16x128xf32>
    %45 = arith.addf %0, %44 : vector<16x128xf32>
    %cst_15 = arith.constant 0.000000e+00 : f32
    %46 = vector.broadcast %cst_15 : f32 to vector<16x128xf32>
    %47 = arith.maximumf %45, %46 : vector<16x128xf32>
    %48 = vector.broadcast %43 : f32 to vector<16x128xf32>
    %49 = arith.mulf %48, %47 : vector<16x128xf32>
    %50 = arith.addf %41, %49 : vector<16x128xf32>
    %c6 = arith.constant 6 : index
    %c0_16 = arith.constant 0 : index
    %51 = vector.load %arg5[%c6, %c0_16] : memref<9x128xf32, #tpu.memory_space<vmem>>, vector<1x128xf32>
    %c5_17 = arith.constant 5 : index
    %52 = memref.load %arg6[%c5_17] : memref<9xf32, #tpu.memory_space<smem>>
    %53 = vector.broadcast %51 : vector<1x128xf32> to vector<16x128xf32>
    %54 = arith.addf %0, %53 : vector<16x128xf32>
    %cst_18 = arith.constant 0.000000e+00 : f32
    %55 = vector.broadcast %cst_18 : f32 to vector<16x128xf32>
    %56 = arith.maximumf %54, %55 : vector<16x128xf32>
    %57 = vector.broadcast %52 : f32 to vector<16x128xf32>
    %58 = arith.mulf %57, %56 : vector<16x128xf32>
    %59 = arith.addf %50, %58 : vector<16x128xf32>
    %c7 = arith.constant 7 : index
    %c0_19 = arith.constant 0 : index
    %60 = vector.load %arg5[%c7, %c0_19] : memref<9x128xf32, #tpu.memory_space<vmem>>, vector<1x128xf32>
    %c6_20 = arith.constant 6 : index
    %61 = memref.load %arg6[%c6_20] : memref<9xf32, #tpu.memory_space<smem>>
    %62 = vector.broadcast %60 : vector<1x128xf32> to vector<16x128xf32>
    %63 = arith.addf %0, %62 : vector<16x128xf32>
    %cst_21 = arith.constant 0.000000e+00 : f32
    %64 = vector.broadcast %cst_21 : f32 to vector<16x128xf32>
    %65 = arith.maximumf %63, %64 : vector<16x128xf32>
    %66 = vector.broadcast %61 : f32 to vector<16x128xf32>
    %67 = arith.mulf %66, %65 : vector<16x128xf32>
    %68 = arith.addf %59, %67 : vector<16x128xf32>
    %c8_22 = arith.constant 8 : index
    %c0_23 = arith.constant 0 : index
    %69 = vector.load %arg5[%c8_22, %c0_23] : memref<9x128xf32, #tpu.memory_space<vmem>>, vector<1x128xf32>
    %c7_24 = arith.constant 7 : index
    %70 = memref.load %arg6[%c7_24] : memref<9xf32, #tpu.memory_space<smem>>
    %71 = vector.broadcast %69 : vector<1x128xf32> to vector<16x128xf32>
    %72 = arith.addf %0, %71 : vector<16x128xf32>
    %cst_25 = arith.constant 0.000000e+00 : f32
    %73 = vector.broadcast %cst_25 : f32 to vector<16x128xf32>
    %74 = arith.maximumf %72, %73 : vector<16x128xf32>
    %75 = vector.broadcast %70 : f32 to vector<16x128xf32>
    %76 = arith.mulf %75, %74 : vector<16x128xf32>
    %77 = arith.addf %68, %76 : vector<16x128xf32>
    %c0_26 = arith.constant 0 : index
    %c0_27 = arith.constant 0 : index
    %78 = vector.load %arg3[%c0_26, %c0_27] : memref<128x128xf32, #tpu.memory_space<vmem>>, vector<128x128xf32>
    %cst_28 = arith.constant dense<0.000000e+00> : vector<16x128xf32>
    %79 = tpu.matmul %77, %78, %cst_28 {dimension_numbers = #tpu.dot_dimension_numbers<[1], [0], [0], [1], [0, 0, 1, 1], [], []>} : vector<16x128xf32>, vector<128x128xf32>, vector<16x128xf32> -> vector<16x128xf32>
    %c0_29 = arith.constant 0 : index
    %c0_30 = arith.constant 0 : index
    %80 = vector.load %arg2[%c0_29, %c0_30] : memref<16x17xf32, #tpu.memory_space<vmem>>, vector<16x17xf32>
    %c0_31 = arith.constant 0 : index
    %c0_32 = arith.constant 0 : index
    %81 = vector.load %arg4[%c0_31, %c0_32] : memref<17x128xf32, #tpu.memory_space<vmem>>, vector<17x128xf32>
    %cst_33 = arith.constant dense<0.000000e+00> : vector<16x128xf32>
    %82 = tpu.matmul %80, %81, %cst_33 {dimension_numbers = #tpu.dot_dimension_numbers<[1], [0], [0], [1], [0, 0, 1, 1], [], []>} : vector<16x17xf32>, vector<17x128xf32>, vector<16x128xf32> -> vector<16x128xf32>
    %c0_34 = arith.constant 0 : index
    %c0_35 = arith.constant 0 : index
    %83 = vector.load %arg5[%c0_34, %c0_35] : memref<9x128xf32, #tpu.memory_space<vmem>>, vector<1x128xf32>
    %84 = vector.broadcast %83 : vector<1x128xf32> to vector<16x128xf32>
    %85 = arith.mulf %84, %0 : vector<16x128xf32>
    %86 = arith.addf %85, %79 : vector<16x128xf32>
    %87 = arith.addf %86, %82 : vector<16x128xf32>
    %c0_36 = arith.constant 0 : index
    %c0_37 = arith.constant 0 : index
    %88 = vector.load %arg7[%c0_36, %c0_37] : memref<16x128xf32, #tpu.memory_space<vmem>>, vector<16x128xf32>
    tpu.vector_store %arg7[%c0_36, %c0_37], %87 {strides = array<i32>} : memref<16x128xf32, #tpu.memory_space<vmem>>, vector<16x128xf32>,
    return
  }
  func.func @transform_0(%arg0: i32) -> (i32, i32) {
    %c0_i32 = arith.constant 0 : i32
    %c0_i32_0 = arith.constant 0 : i32
    return %arg0, %c0_i32 : i32, i32
  }
  func.func @transform_1(%arg0: i32) -> (i32, i32) {
    %c0_i32 = arith.constant 0 : i32
    %c0_i32_0 = arith.constant 0 : i32
    return %arg0, %c0_i32 : i32, i32
  }
  func.func @transform_2(%arg0: i32) -> (i32, i32) {
    %c0_i32 = arith.constant 0 : i32
    %c0_i32_0 = arith.constant 0 : i32
    %c0_i32_1 = arith.constant 0 : i32
    return %c0_i32, %c0_i32_0 : i32, i32
  }
  func.func @transform_3(%arg0: i32) -> (i32, i32) {
    %c0_i32 = arith.constant 0 : i32
    %c0_i32_0 = arith.constant 0 : i32
    %c0_i32_1 = arith.constant 0 : i32
    return %c0_i32, %c0_i32_0 : i32, i32
  }
  func.func @transform_4(%arg0: i32) -> (i32, i32) {
    %c0_i32 = arith.constant 0 : i32
    %c0_i32_0 = arith.constant 0 : i32
    %c0_i32_1 = arith.constant 0 : i32
    return %c0_i32, %c0_i32_0 : i32, i32
  }
  func.func @transform_5(%arg0: i32) -> i32 {
    %c0_i32 = arith.constant 0 : i32
    %c0_i32_0 = arith.constant 0 : i32
    return %c0_i32 : i32
  }
  func.func @transform_6(%arg0: i32) -> (i32, i32) {
    %c0_i32 = arith.constant 0 : i32
    %c0_i32_0 = arith.constant 0 : i32
    return %arg0, %c0_i32 : i32, i32
  }
}

</mosaic_0001>

<bundles_post_ra>
// kernel: tpu_custom_call.1
= control target key start
LH: loop header
LB: loop body
LE: loop exit
PB: predicated region body
PF: predicated region fallthrough
CT: control target
= control target key end

     0   :  { %11 = vsyncpa [#allocation3], 0  ;;  %s952_s0 = inlined_call_operand.hbm [shape: f32[16,128], index: 0, kind: input, shape index: {}]   ;;  %s953_s1 = inlined_call_operand.hbm [shape: f32[16,17], index: 1, kind: input, shape index: {}]   ;;  %s954_s2 = inlined_call_operand.hbm [shape: f32[128,128], index: 2, kind: input, shape index: {}]   ;;  %s955_s3 = inlined_call_operand.hbm [shape: f32[17,128], index: 3, kind: input, shape index: {}]   ;;  %s956_s4 = inlined_call_operand.hbm [shape: f32[9,128], index: 4, kind: input, shape index: {}]   ;;  %s957_s5 = inlined_call_operand.vmem [shape: f32[9], index: 5, kind: input, shape index: {}]   ;;  %s958_s6 = inlined_call_operand.hbm [shape: f32[16,128], index: 6, kind: output, shape index: {}]  }
   0x1   :  { %12 = vsyncpa [#allocation7], 0 }
   0x2   :  { %13 = vsyncpa [#allocation10], 0 }
   0x3   :  { %14 = vsyncpa [#allocation5], 0 }
   0x4   :  { %15 = vsyncpa [#allocation4], 0  ;;  %s738_s21 = smov [#allocation6]   ;;  %s739_s23 = smov [#allocation9]  }
   0x5   :  { %s33_s22 = sshll.u32 %s738_s21, 4  ;;  %s57_s24 = sshll.u32 %s739_s23, 4  ;;  %s34_s22 = int_to_ptr.vmem [resolvable:$true] %s33_s22  ;;  %s782_s24 = int_to_ptr.vmem [resolvable:$true] %s57_s24 }
   0x6   :  { %s584_s27 = scalar_lea.hbm %s953_s1, 256 }
   0x7   :  { %p585_p0 = scmp.ne.s32.totalorder %s953_s1, %s584_s27  ;;  %p588_p1 = scmp.lt.u32.totalorder %s584_s27, %s953_s1 }
   0x9   :  { %p590_p2 = pnand %p588_p1, %p585_p0 }
   0xb   :  { %593 = shalt.err (!%p590_p2)
}
   0xc   :  { %s594_s8 = scalar_lea.vmem %s34_s22, 256  ;;  %p599_p4 = scmp.lt.s32.totalorder %s34_s22, %s34_s22 }
   0xd   :  { %p595_p3 = scmp.ne.s32.totalorder %s34_s22, %s594_s8  ;;  %p600_p5 = scmp.lt.s32.totalorder %s594_s8, %s594_s8 }
   0xf   :  { %p601_p6 = por %p600_p5, %p599_p4 }
  0x11   :  { %p602_p7 = pnand %p601_p6, %p595_p3 }
  0x13   :  { %605 = shalt.err (!%p602_p7)
}
  0x14   :  { %s740_s9 = smov 128   ;;  %s741_s10 = smov 8  }
  0x15   :  { %39 = dma.hbm_to_vmem [thread:$0]  %s953_s1, 256, %s34_s22, [#allocation7], %s740_s9, %s740_s9, %s741_s10  }
  0x16   :  { %s606_s15 = scalar_lea.hbm %s955_s3, 384 }
  0x17   :  { %p607_p8 = scmp.ne.s32.totalorder %s955_s3, %s606_s15  ;;  %p610_p9 = scmp.lt.u32.totalorder %s606_s15, %s955_s3 }
  0x19   :  { %p612_p10 = pnand %p610_p9, %p607_p8 }
  0x1b   :  { %615 = shalt.err (!%p612_p10)
}
  0x1c   :  { %s616_s20 = scalar_lea.vmem %s782_s24, 384  ;;  %p621_p12 = scmp.lt.s32.totalorder %s782_s24, %s782_s24 }
  0x1d   :  { %p617_p11 = scmp.ne.s32.totalorder %s782_s24, %s616_s20  ;;  %p622_p13 = scmp.lt.s32.totalorder %s616_s20, %s616_s20 }
  0x1f   :  { %p623_p0 = por %p622_p13, %p621_p12 }
  0x21   :  { %p624_p1 = pnand %p623_p0, %p617_p11 }
  0x23   :  { %627 = shalt.err (!%p624_p1)
}
  0x24   :  { %63 = dma.hbm_to_vmem [thread:$0]  %s955_s3, 384, %s782_s24, [#allocation10], %s740_s9, %s740_s9, %s741_s10  }
  0x25   :  { %s742_s22 = smov [#allocation2]   ;;  %s743_s25 = smov [#allocation8]  }
  0x26   :  { %s21_s23 = sshll.u32 %s742_s22, 4  ;;  %s45_s26 = sshll.u32 %s743_s25, 4  ;;  %s22_s23 = int_to_ptr.vmem [resolvable:$true] %s21_s23  ;;  %s819_s26 = int_to_ptr.vmem [resolvable:$true] %s45_s26 }
  0x27   :  { %s628_s29 = scalar_lea.hbm %s952_s0, 256 }
  0x28   :  { %p629_p2 = scmp.ne.s32.totalorder %s952_s0, %s628_s29  ;;  %p632_p3 = scmp.lt.u32.totalorder %s628_s29, %s952_s0 }
  0x2a   :  { %p634_p4 = pnand %p632_p3, %p629_p2 }
  0x2c   :  { %637 = shalt.err (!%p634_p4)
}
  0x2d   :  { %s638_s3 = scalar_lea.vmem %s22_s23, 256  ;;  %p643_p6 = scmp.lt.s32.totalorder %s22_s23, %s22_s23 }
  0x2e   :  { %p639_p5 = scmp.ne.s32.totalorder %s22_s23, %s638_s3  ;;  %p644_p7 = scmp.lt.s32.totalorder %s638_s3, %s638_s3 }
  0x30   :  { %p645_p8 = por %p644_p7, %p643_p6 }
  0x32   :  { %p646_p9 = pnand %p645_p8, %p639_p5 }
  0x34   :  { %649 = shalt.err (!%p646_p9)
}
  0x35   :  { %27 = dma.hbm_to_vmem [thread:$0]  %s952_s0, 256, %s22_s23, [#allocation3], %s740_s9, %s740_s9, %s741_s10  }
  0x36   :  { %s650_s15 = scalar_lea.hbm %s954_s2, 2048 }
  0x37   :  { %p651_p10 = scmp.ne.s32.totalorder %s954_s2, %s650_s15  ;;  %p654_p11 = scmp.lt.u32.totalorder %s650_s15, %s954_s2 }
  0x39   :  { %p656_p12 = pnand %p654_p11, %p651_p10 }
  0x3b   :  { %659 = shalt.err (!%p656_p12)
}
  0x3c   :  { %s660_s20 = scalar_lea.vmem %s819_s26, 2048  ;;  %p665_p0 = scmp.lt.s32.totalorder %s819_s26, %s819_s26 }
  0x3d   :  { %p661_p13 = scmp.ne.s32.totalorder %s819_s26, %s660_s20  ;;  %p666_p1 = scmp.lt.s32.totalorder %s660_s20, %s660_s20 }
  0x3f   :  { %p667_p2 = por %p666_p1, %p665_p0 }
  0x41   :  { %p668_p3 = pnand %p667_p2, %p661_p13 }
  0x43   :  { %671 = shalt.err (!%p668_p3)
}
  0x44   :  { %51 = dma.hbm_to_vmem [thread:$0]  %s954_s2, 2048, %s819_s26, [#allocation7], %s740_s9, %s740_s9, %s741_s10  }
  0x45   :  { %s82_s23 = sshll.u32 %s957_s5, 4  ;;  %s744_s25 = smov [#allocation11]   ;;  %s83_s23 = int_to_ptr.vmem [resolvable:$true] %s82_s23 }
  0x46   :  { %s69_s27 = sshll.u32 %s744_s25, 4  ;;  %s672_s30 = scalar_lea.hbm %s956_s4, 256  ;;  %s70_s27 = int_to_ptr.vmem [resolvable:$true] %s69_s27 }
  0x47   :  { %p673_p4 = scmp.ne.s32.totalorder %s956_s4, %s672_s30  ;;  %p676_p5 = scmp.lt.u32.totalorder %s672_s30, %s956_s4 }
  0x49   :  { %p678_p6 = pnand %p676_p5, %p673_p4 }
  0x4b   :  { %681 = shalt.err (!%p678_p6)
}
  0x4c   :  { %s682_s2 = scalar_lea.vmem %s70_s27, 256  ;;  %p687_p8 = scmp.lt.s32.totalorder %s70_s27, %s70_s27 }
  0x4d   :  { %p683_p7 = scmp.ne.s32.totalorder %s70_s27, %s682_s2  ;;  %p688_p9 = scmp.lt.s32.totalorder %s682_s2, %s682_s2 }
  0x4f   :  { %p689_p10 = por %p688_p9, %p687_p8 }
  0x51   :  { %p690_p11 = pnand %p689_p10, %p683_p7 }
  0x53   :  { %693 = shalt.err (!%p690_p11)
}
  0x54   :  { %75 = dma.hbm_to_vmem [thread:$0]  %s956_s4, 256, %s70_s27, [#allocation10], %s740_s9, %s740_s9, %s741_s10  }
  0x55   :  { %s694_s24 = scalar_lea.vmem %s83_s23, 16  ;;  %p699_p13 = scmp.lt.s32.totalorder %s83_s23, %s83_s23 }
  0x56   :  { %p695_p12 = scmp.ne.s32.totalorder %s83_s23, %s694_s24  ;;  %p700_p0 = scmp.lt.s32.totalorder %s694_s24, %s694_s24 }
  0x58   :  { %p701_p1 = por %p700_p0, %p699_p13 }
  0x5a   :  { %p702_p2 = pnand %p701_p1, %p695_p12 }
  0x5c   :  { %705 = shalt.err (!%p702_p2)
}
  0x5d   :  { %s745_s12 = smov [#allocation12]  }
  0x5e   :  { %85 = dma.vmem_to_smem %s83_s23, 16, %s745_s12, [#allocation5]  }
  0x5f   :  { %728 = dma.done.wait [#allocation3], 256  }
  0x60   :  { %729 = vsyncadd [#allocation3], 4294967040 }
  0x61   :  { %730 = dma.done.wait [#allocation7], 2304  }
  0x62   :  { %731 = vsyncadd [#allocation7], 4294964992 }
  0x63   :  { %732 = dma.done.wait [#allocation10], 640  }
  0x64   :  { %733 = vsyncadd [#allocation10], 4294966656 }
  0x65   :  { %734 = dma.done.wait [#allocation5], 16  }
  0x66   :  { %735 = vsyncadd [#allocation5], 4294967280 }
  0x67   :  { %104 = sfence }
  0x68   :  { %v233_v0 = vld [vmem:[#allocation8] sm:$0xff]  ;;  %v234_v1 = vld [vmem:[#allocation8 + $0x8] sm:$0xff]  ;;  %v235_v2 = vld [vmem:[#allocation8 + $0x10] sm:$0xff]  ;;  %s874_s4 = sld [smem:[#allocation12 + $0x8]]  ;;  %s878_s14 = sld [smem:[#allocation12 + $0x1]]  ;;  %vm329_vm0 = vcmask 138240  }
  0x69   :  { %v535_v3 = vpack.c.bf16 %v234_v1, %v233_v0  ;;  %v236_v4 = vld [vmem:[#allocation8 + $0x18] sm:$0xff]  ;;  %v237_v6 = vld [vmem:[#allocation8 + $0x20] sm:$0xff]  ;;  %v238_v7 = vld [vmem:[#allocation8 + $0x28] sm:$0xff]  ;;  %s876_s13 = sld [smem:[#allocation12]]  ;;  %s880_s15 = sld [smem:[#allocation12 + $0x2]]  ;;  %vm336_vm1 = vcmask 1040384  }
  0x6a   :  { %v539_v5 = vpack.c.bf16 %v236_v4, %v235_v2  ;;  %v239_v8 = vld [vmem:[#allocation8 + $0x30] sm:$0xff]  ;;  %v240_v9 = vld [vmem:[#allocation8 + $0x38] sm:$0xff]  ;;  %v326_v10 = vld [vmem:[#allocation9] sm:$0xff]  ;;  %v543_v11 = vpack.c.bf16 %v238_v7, %v237_v6  ;;  %s884_s16 = sld [smem:[#allocation12 + $0x3]]  ;;  %s892_s17 = sld [smem:[#allocation12 + $0x4]] }
  0x6b   :  { %536 = vmatprep.subr.bf16.mxu1 %v535_v3  ;;  %v241_v12 = vld [vmem:[#allocation8 + $0x40] sm:$0xff]  ;;  %v242_v13 = vld [vmem:[#allocation8 + $0x48] sm:$0xff]  ;;  %v328_v16 = vld [vmem:[#allocation9 + $0x10] sm:$0x1]  ;;  %v547_v24 = vpack.c.bf16 %v240_v9, %v239_v8  ;;  %s902_s18 = sld [smem:[#allocation12 + $0x5]]  ;;  %s908_s19 = sld [smem:[#allocation12 + $0x6]] }
  0x6c   :  { %538 = vmatpush3.bf16.msra.mxu1 %v535_v3  ;;  %v327_v14 = vld [vmem:[#allocation9 + $0x8] sm:$0xff]  ;;  %v324_v17 = vld [vmem:[#allocation6] sm:$0xff]  ;;  %v882_v18 = vld [vmem:[#allocation2] sm:$0xff]  ;;  %v894_v27 = vpack.c.bf16 %v242_v13, %v241_v12  ;;  %s915_s20 = sld [smem:[#allocation12 + $0x7]]  ;;  %s746_s0 = smov [#allocation13]  }
  0x6d   :  { %540 = vmatprep.subr.bf16.mxu1 %v539_v5  ;;  %v567_v15 = vpack.c.bf16 %v327_v14, %v326_v10  ;;  %532 = vmatprep.mubr.msk.f32.mxu0 %vm329_vm0, %v324_v17  ;;  %v887_v19 = vld [vmem:[#allocation2 + $0x8] sm:$0xff]  ;;  %v107_v20 = vmax.f32 %v882_v18, 0.0  ;;  %v449_v22 = vld [vmem:[#allocation11 + $0x1] ss:$0 sm:$0xff]  ;;  %v451_v23 = vld [vmem:[#allocation11 + $0x2] ss:$0 sm:$0xff] }
  0x6e   :  { %v110_v21 = vstv %s874_s4  ;;  %v119_v25 = vadd.f32 %v449_v22, %v882_v18  ;;  %v453_v26 = vld [vmem:[#allocation11 + $0x3] ss:$0 sm:$0xff]  ;;  %v243_v28 = vld [vmem:[#allocation8 + $0x50] sm:$0xff]  ;;  %v120_v30 = vadd.f32 %v449_v22, %v887_v19  ;;  %v134_v32 = vadd.f32 %v451_v23, %v882_v18  ;;  %v455_v33 = vld [vmem:[#allocation11 + $0x4] ss:$0 sm:$0xff]  ;;  %s433_s1 = sshll.u32 %s746_s0, 4  ;;  %s434_s1 = int_to_ptr.vmem [resolvable:$true] %s433_s1 }
  0x6f   :  { %568 = vmatprep.subr.bf16.mxu0 %v567_v15  ;;  %v244_v29 = vld [vmem:[#allocation8 + $0x58] sm:$0xff]  ;;  %v123_v31 = vstv %s876_s13  ;;  %v245_v34 = vld [vmem:[#allocation8 + $0x60] sm:$0xff]  ;;  %v246_v35 = vld [vmem:[#allocation8 + $0x68] sm:$0xff]  ;;  %v111_v36 = vmul.f32 %v110_v21, %v107_v20  ;;  %v138_v38 = vstv %s878_s14  ;;  %v149_v39 = vadd.f32 %v453_v26, %v882_v18  ;;  %s706_s21 = scalar_lea.vmem %s434_s1, 256  ;;  %p711_p4 = scmp.lt.s32.totalorder %s434_s1, %s434_s1 }
  0x70   :  { %542 = vmatpush3.bf16.msra.mxu1 %v539_v5  ;;  %570 = vmatpush3.bf16.msra.mxu0 %v567_v15  ;;  %v121_v37 = vmax.f32 %v119_v25, 0.0  ;;  %v108_v40 = vmax.f32 %v887_v19, 0.0  ;;  %v135_v41 = vadd.f32 %v451_v23, %v887_v19  ;;  %v136_v42 = vmax.f32 %v134_v32, 0.0  ;;  %v325_v44 = vld [vmem:[#allocation6 + $0x8] sm:$0xff]  ;;  %v463_v12 = vld [vmem:[#allocation11 + $0x8] ss:$0 sm:$0xff]  ;;  %p707_p3 = scmp.ne.s32.totalorder %s434_s1, %s706_s21  ;;  %p712_p5 = scmp.lt.s32.totalorder %s706_s21, %s706_s21 }
  0x71   :  { %544 = vmatprep.subr.bf16.mxu1 %v543_v11  ;;  %530 = vmatprep.subr.msk.mxu0 %vm336_vm1, %v328_v16  ;;  %v153_v43 = vstv %s880_s15  ;;  %v555_v45 = vpack.c.bf16 %v244_v29, %v243_v28  ;;  %v151_v47 = vmax.f32 %v149_v39, 0.0  ;;  %v164_v48 = vadd.f32 %v455_v33, %v882_v18  ;;  %v457_v49 = vld [vmem:[#allocation11 + $0x5] ss:$0 sm:$0xff]  ;;  %v459_v54 = vld [vmem:[#allocation11 + $0x6] ss:$0 sm:$0xff]  ;;  %v247_v28 = vld [vmem:[#allocation8 + $0x70] sm:$0xff] }
  0x72   :  { %v124_v46 = vmul.f32 %v123_v31, %v121_v37  ;;  %v910_v50 = vpack.c.bf16 %v246_v35, %v245_v34  ;;  %v122_v51 = vmax.f32 %v120_v30, 0.0  ;;  %v139_v52 = vmul.f32 %v138_v38, %v136_v42  ;;  %v461_v63 = vld [vmem:[#allocation11 + $0x7] ss:$0 sm:$0xff]  ;;  %p713_p6 = por %p712_p5, %p711_p4 }
  0x73   :  { %v150_v53 = vadd.f32 %v453_v26, %v887_v19  ;;  %v154_v56 = vmul.f32 %v153_v43, %v151_v47  ;;  %v166_v57 = vmax.f32 %v164_v48, 0.0  ;;  %v168_v58 = vstv %s884_s16  ;;  %v248_v29 = vld [vmem:[#allocation8 + $0x78] sm:$0xff] }
  0x74   :  { %546 = vmatpush3.bf16.msra.mxu1 %v543_v11  ;;  %531 = vmatpush3.msk.msra.mxu0 %vm336_vm1, %v328_v16  ;;  %v126_v55 = vadd.f32 %v124_v46, %v111_v36  ;;  %v112_v59 = vmul.f32 %v110_v21, %v108_v40  ;;  %v137_v60 = vmax.f32 %v135_v41, 0.0  ;;  %v165_v61 = vadd.f32 %v455_v33, %v887_v19  ;;  %p714_p7 = pnand %p713_p6, %p707_p3 }
  0x75   :  { %548 = vmatprep.subr.bf16.mxu1 %v547_v24  ;;  %533 = vmatmul.mubr.msk.f32.vlgmr.msra.gmra.mrb[0].mxu0 %vm329_vm0, %v325_v44  ;;  %v179_v62 = vadd.f32 %v457_v49, %v882_v18  ;;  %v169_v1 = vmul.f32 %v168_v58, %v166_v57  ;;  %v183_v2 = vstv %s892_s17  ;;  %v194_v3 = vadd.f32 %v459_v54, %v882_v18 }
  0x76   :  { %v141_v0 = vadd.f32 %v139_v52, %v126_v55  ;;  %v125_v4 = vmul.f32 %v123_v31, %v122_v51  ;;  %v152_v5 = vmax.f32 %v150_v53, 0.0  ;;  %v180_v6 = vadd.f32 %v457_v49, %v887_v19 }
  0x77   :  { %v181_v7 = vmax.f32 %v179_v62, 0.0  ;;  %v196_v9 = vmax.f32 %v194_v3, 0.0  ;;  %v198_v10 = vstv %s902_s18  ;;  %v209_v11 = vadd.f32 %v461_v63, %v882_v18 }
  0x78   :  { %550 = vmatpush3.bf16.msra.mxu1 %v547_v24  ;;  %v156_v8 = vadd.f32 %v154_v56, %v141_v0  ;;  %v140_v13 = vmul.f32 %v138_v38, %v137_v60  ;;  %v167_v14 = vmax.f32 %v165_v61, 0.0  ;;  %v195_v16 = vadd.f32 %v459_v54, %v887_v19 }
  0x79   :  { %552 = vmatprep.subr.bf16.mxu1 %v894_v27  ;;  %v184_v15 = vmul.f32 %v183_v2, %v181_v7  ;;  %v199_v20 = vmul.f32 %v198_v10, %v196_v9  ;;  %v211_v21 = vmax.f32 %v209_v11, 0.0  ;;  %v213_v22 = vstv %s908_s19 }
  0x7a   :  { %v171_v17 = vadd.f32 %v169_v1, %v156_v8  ;;  %v155_v23 = vmul.f32 %v153_v43, %v152_v5  ;;  %v182_v24 = vmax.f32 %v180_v6, 0.0  ;;  %v210_v25 = vadd.f32 %v461_v63, %v887_v19 }
  0x7b   :  { %v224_v26 = vadd.f32 %v463_v12, %v882_v18  ;;  %v214_v31 = vmul.f32 %v213_v22, %v211_v21  ;;  %v228_v32 = vstv %s915_s20  ;;  %v127_v33 = vadd.f32 %v125_v4, %v112_v59 }
  0x7c   :  { %554 = vmatpush3.bf16.msra.mxu1 %v894_v27  ;;  %v186_v30 = vadd.f32 %v184_v15, %v171_v17  ;;  %v170_v34 = vmul.f32 %v168_v58, %v167_v14  ;;  %v197_v27 = vmax.f32 %v195_v16, 0.0  ;;  %v225_v37 = vadd.f32 %v463_v12, %v887_v19  ;;  %v467_v58 = vld [vmem:[#allocation11] ss:$0 sm:$0xff] }
  0x7d   :  { %556 = vmatprep.subr.bf16.mxu1 %v555_v45  ;;  %v226_v35 = vmax.f32 %v224_v26, 0.0  ;;  %v142_v38 = vadd.f32 %v140_v13, %v127_v33  ;;  %v563_v39 = vpack.c.bf16 %v248_v29, %v247_v28  ;;  %v185_v41 = vmul.f32 %v183_v2, %v182_v24 }
  0x7e   :  { %v201_v36 = vadd.f32 %v199_v20, %v186_v30  ;;  %v212_v42 = vmax.f32 %v210_v25, 0.0  ;;  %v200_v46 = vmul.f32 %v198_v10, %v197_v27  ;;  %v227_v47 = vmax.f32 %v225_v37, 0.0 }
  0x7f   :  { %v229_v40 = vmul.f32 %v228_v32, %v226_v35  ;;  %v157_v44 = vadd.f32 %v155_v23, %v142_v38  ;;  %v421_v59 = vmul.f32 %v467_v58, %v887_v19  ;;  %v420_v60 = vmul.f32 %v467_v58, %v882_v18 }
  0x80   :  { %558 = vmatpush3.bf16.msra.mxu1 %v555_v45  ;;  %v216_v43 = vadd.f32 %v214_v31, %v201_v36  ;;  %v215_v45 = vmul.f32 %v213_v22, %v212_v42  ;;  %v230_v52 = vmul.f32 %v228_v32, %v227_v47 }
  0x81   :  { %560 = vmatprep.subr.bf16.mxu1 %v910_v50  ;;  %v172_v49 = vadd.f32 %v170_v34, %v157_v44 }
  0x82   :  { %v231_v48 = vadd.f32 %v229_v40, %v216_v43 }
  0x83   :  { %v187_v51 = vadd.f32 %v185_v41, %v172_v49 }
  0x84   :  { %562 = vmatpush3.bf16.msra.mxu1 %v910_v50  ;;  %523 = vmatprep.mubr.f32.mxu1 %v231_v48 }
  0x85   :  { %564 = vmatprep.subr.bf16.mxu1 %v563_v39  ;;  %v202_v53 = vadd.f32 %v200_v46, %v187_v51 }
  0x87   :  { %v217_v54 = vadd.f32 %v215_v45, %v202_v53 }
  0x88   :  { %566 = vmatpush3.bf16.msra.mxu1 %v563_v39 }
  0x89   :  { %v232_v55 = vadd.f32 %v230_v52, %v217_v54 }
  0x8b   :  { %524 = vmatmul.mubr.f32.vlgmr.msra.gmra.mrb[0].mxu1 %v232_v55 }
 0x148   :  { %v534_v56 = vpop.f32.mrb[0].mxu0 }
 0x149   :  { %v406_v57 = vpop.f32.mrb[1].mxu0 }
 0x15e   :  { %v525_v50 = vpop.f32.mrb[0].mxu1 }
 0x15f   :  { %v571_v61 = vadd.f32 %v534_v56, %v525_v50  ;;  %v315_v62 = vpop.f32.mrb[1].mxu1 }
 0x160   :  { %v573_v63 = vadd.f32 %v406_v57, %v315_v62 }
 0x161   :  { %v572_v0 = vadd.f32 %v571_v61, %v421_v59 }
 0x162   :  { %v574_v1 = vadd.f32 %v573_v63, %v420_v60 }
 0x163   :  { %427 = vst [vmem:[#allocation13 + $0x8] sm:$0xff] %v572_v0 }
 0x164   :  { %426 = vst [vmem:[#allocation13] sm:$0xff] %v574_v1 }
 0x165   :  { %717 = shalt.err (!%p714_p7)
}
 0x166   :  { %s718_s25 = scalar_lea.hbm %s958_s6, 256 }
 0x167   :  { %p719_p8 = scmp.ne.s32.totalorder %s958_s6, %s718_s25  ;;  %p722_p9 = scmp.lt.u32.totalorder %s718_s25, %s958_s6 }
 0x169   :  { %p724_p10 = pnand %p722_p9, %p719_p8 }
 0x16b   :  { %727 = shalt.err (!%p724_p10)
}
 0x16c   :  { %439 = dma.vmem_to_hbm [thread:$0]  %s434_s1, 256, %s958_s6, [#allocation4], %s740_s9, %s740_s9, %s741_s10  }
 0x16d   :  { %736 = dma.done.wait [#allocation4], 256  }
 0x16e   :  { %737 = vsyncadd [#allocation4], 4294967040 }
 0x16f   :  { %443 = vsyncpa [#allocation3], 1 }
 0x170   :  { %444 = vsyncpa [#allocation7], 1 }
 0x171   :  { %445 = vsyncpa [#allocation10], 1 }
 0x172   :  { %446 = vsyncpa [#allocation4], 1 }
 0x173   :  { %447 = vsyncpa [#allocation5], 1 }

</bundles_post_ra>
